<compile_context>
chip_gen: v5e
topology: v5e:2x2
jax: 0.10.0
libtpu: 0.0.40
codegen_flags: <defaults>
</compile_context>

<pallas_src>
import functools
import math

import jax
import jax.numpy as jnp
from jax.experimental import pallas as pl
from jax.experimental.pallas import tpu as pltpu

_LOG2E = math.log2(math.e)


def _compute_dtype(dtype):
    # bf16 MXU operands for f32 inputs; accumulation stays f32 everywhere.
    return jnp.bfloat16 if dtype == jnp.float32 else dtype


def _online_softmax_step(q, k, v, m_sc, l_sc, acc_sc, compute_dtype):
    """One streamed-softmax update. q is pre-scaled by (1/sqrt(E))*log2(e)."""
    # scores (log2 units): contract E of both operands (no materialized K^T).
    s = jax.lax.dot_general(
        q, k,
        dimension_numbers=(((1,), (1,)), ((), ())),
        preferred_element_type=jnp.float32,
    )                                                      # (TQ, TKV) f32

    m_prev = m_sc[...]                                     # (TQ, 1)
    m_new = jnp.maximum(m_prev, jnp.max(s, axis=-1, keepdims=True))
    alpha = jnp.exp2(m_prev - m_new)                       # rescale factor
    p = jnp.exp2(s - m_new)                                # (TQ, TKV) f32

    l_sc[...] = alpha * l_sc[...] + jnp.sum(p, axis=-1, keepdims=True)
    acc_sc[...] = alpha * acc_sc[...] + jnp.dot(
        p.astype(compute_dtype), v, preferred_element_type=jnp.float32)
    m_sc[...] = m_new


def _sdpa_grid_kernel(q_ref, k_ref, v_ref, o_ref, q_sc, m_sc, l_sc, acc_sc,
                      *, scale, compute_dtype):
    """3-axis grid (bh, q_tile, kv_tile); K/V streamed via BlockSpec."""
    kv = pl.program_id(2)

    @pl.when(kv == 0)
    def _init():
        # Fold the softmax scale (in base 2) into Q once per q tile.
        q_sc[...] = (q_ref[...].astype(jnp.float32)
                     * (scale * _LOG2E)).astype(compute_dtype)
        m_sc[...] = jnp.full_like(m_sc, -jnp.inf)
        l_sc[...] = jnp.zeros_like(l_sc)
        acc_sc[...] = jnp.zeros_like(acc_sc)

    _online_softmax_step(
        q_sc[...],
        k_ref[...].astype(compute_dtype),
        v_ref[...].astype(compute_dtype),
        m_sc, l_sc, acc_sc, compute_dtype)

    @pl.when(kv == pl.num_programs(2) - 1)
    def _finalize():
        inv_l = pl.reciprocal(l_sc[...], approx=False)
        o_ref[...] = (acc_sc[...] * inv_l).astype(o_ref.dtype)


def _sdpa_resident_kernel(q_ref, k_ref, v_ref, o_ref, m_sc, l_sc, acc_sc,
                          *, scale, compute_dtype, tkv):
    """2-axis grid (bh, q_tile); full-S K/V resident in VMEM, kv loop inside."""
    m_sc[...] = jnp.full_like(m_sc, -jnp.inf)
    l_sc[...] = jnp.zeros_like(l_sc)
    acc_sc[...] = jnp.zeros_like(acc_sc)

    q = (q_ref[...].astype(jnp.float32) * (scale * _LOG2E)).astype(compute_dtype)
    n_kv = k_ref.shape[0] // tkv

    @pl.loop(0, n_kv)
    def _step(j):
        off = pl.multiple_of(j * tkv, tkv)
        k = k_ref[pl.ds(off, tkv), :].astype(compute_dtype)
        v = v_ref[pl.ds(off, tkv), :].astype(compute_dtype)
        _online_softmax_step(q, k, v, m_sc, l_sc, acc_sc, compute_dtype)

    inv_l = pl.reciprocal(l_sc[...], approx=False)
    o_ref[...] = (acc_sc[...] * inv_l).astype(o_ref.dtype)


def _pick_tile(n, candidates):
    """Largest candidate that evenly divides n, else the full extent."""
    for c in candidates:
        if c <= n and n % c == 0:
            return c
    return n


def _vmem_limit_bytes():
    """Explicit scoped-VMEM limit: ~3/4 of physical VMEM, capped at 96 MiB.

    Physical VMEM: 128 MiB on v5e/v6e, 64 MiB per TensorCore on v7x -> this
    yields ~96 MiB on v5e/v6e and ~48 MiB on v7x (leaves internal-scratch
    headroom instead of relying on the 16/32 MiB scoped default).
    """
    phys = 64 * 1024 * 1024  # conservative fallback = v7x per-TC size
    try:
        info = pltpu.get_tpu_info()
        phys = int(getattr(info, "vmem_capacity_bytes", phys)) or phys
    except Exception:
        pass
    return min(phys * 3 // 4, 96 * 1024 * 1024)


def _grid_vmem_bytes(tq, tkv, e, itemsize):
    io = 2 * itemsize * 2 * (tq * e + tkv * e)         # dbl-buffered Q,O,K,V
    scratch = itemsize * tq * e + 4 * (tq * e + 2 * tq)  # q stash + f32 acc/m/l
    inter = 4 * 3 * tq * tkv                           # f32 s/p temporaries
    return io + scratch + inter


def _resident_vmem_bytes(tq, s, tkvc, e, itemsize):
    io = 2 * itemsize * 2 * (tq * e + s * e)           # dbl-buffered Q,O + full K,V
    scratch = 4 * (tq * e + 2 * tq)
    inter = 4 * 3 * tq * tkvc
    return io + scratch + inter


def sdpa(query, key, value, *, force_grid_kv=False):
    """Pallas equivalent of torch.nn.functional.scaled_dot_product_attention
    with attn_mask=None, dropout_p=0.0, is_causal=False.

    query: (B, H, L, E), key/value: (B, H, S, E)  ->  (B, H, L, E)
    """
    B, H, L, E = query.shape
    S = key.shape[2]
    assert key.shape == (B, H, S, E)
    assert value.shape == (B, H, S, E)

    BH = B * H
    dtype = query.dtype
    itemsize = dtype.itemsize
    compute_dtype = _compute_dtype(dtype)
    scale = 1.0 / math.sqrt(E)

    q = query.reshape(BH, L, E)
    k = key.reshape(BH, S, E)
    v = value.reshape(BH, S, E)

    vmem_limit = int(_vmem_limit_bytes())
    budget = vmem_limit * 4 // 5          # headroom for Mosaic internal scratch

    # Large query tiles amortize K/V streaming (arithmetic intensity ~ TQ).
    TQ = _pick_tile(L, (1024, 512, 256, 128))
    # v7x has 2 TensorCores: keep >= 2 independent (bh, q_tile) work units.
    if BH * (L // TQ) < 2:
        for c in (512, 256, 128):
            if c < TQ and L % c == 0 and BH * (L // c) >= 2:
                TQ = c
                break

    # kv tiles: multiples of 256 map best onto the v6e/v7x 256x256 MXU;
    # 128 multiples are fine for v5e's 128x128 MXU.
    TKV = _pick_tile(S, (1024, 512, 256, 128))    # grid-path kv tile
    TKVC = _pick_tile(S, (512, 256, 128))         # resident-path in-kernel chunk

    # Resident-K/V fast path: K/V fetched from HBM once per (b, h).
    use_resident = (not force_grid_kv and
                    _resident_vmem_bytes(TQ, S, TKVC, E, itemsize) <= budget // 2)

    flops = 4 * BH * L * S * E                     # QK^T + PV
    transcendentals = BH * L * S                   # exp2 in softmax
    q_bytes = BH * L * E * itemsize
    kv_bytes = 2 * BH * S * E * itemsize
    o_bytes = BH * L * E * itemsize

    if use_resident:
        grid = (BH, L // TQ)
        kernel = functools.partial(_sdpa_resident_kernel, scale=scale,
                                   compute_dtype=compute_dtype, tkv=TKVC)
        grid_spec = pltpu.PrefetchScalarGridSpec(
            num_scalar_prefetch=0,
            grid=grid,
            in_specs=[
                pl.BlockSpec((None, TQ, E), lambda b, i: (b, i, 0)),
                pl.BlockSpec((None, S, E), lambda b, i: (b, 0, 0)),
                pl.BlockSpec((None, S, E), lambda b, i: (b, 0, 0)),
            ],
            out_specs=pl.BlockSpec((None, TQ, E), lambda b, i: (b, i, 0)),
            scratch_shapes=[
                pltpu.VMEM((TQ, 1), jnp.float32),   # running max m (base 2)
                pltpu.VMEM((TQ, 1), jnp.float32),   # running sum l
                pltpu.VMEM((TQ, E), jnp.float32),   # output accumulator
            ],
        )
        dim_sem = ("parallel", "parallel")
        bytes_accessed = q_bytes + o_bytes + kv_bytes          # K/V once per bh
    else:
        # Defensive shrink if the estimate exceeds the per-generation budget.
        while (_grid_vmem_bytes(TQ, TKV, E, itemsize) > budget
               and (TQ > 128 or TKV > 128)):
            if TKV >= TQ and TKV > 128 and TKV % 2 == 0:
                TKV //= 2
            elif TQ > 128 and TQ % 2 == 0:
                TQ //= 2
            else:
                break
        grid = (BH, L // TQ, S // TKV)
        kernel = functools.partial(_sdpa_grid_kernel, scale=scale,
                                   compute_dtype=compute_dtype)
        grid_spec = pltpu.PrefetchScalarGridSpec(
            num_scalar_prefetch=0,
            grid=grid,
            in_specs=[
                pl.BlockSpec((None, TQ, E), lambda b, i, j: (b, i, 0)),
                pl.BlockSpec((None, TKV, E), lambda b, i, j: (b, j, 0)),
                pl.BlockSpec((None, TKV, E), lambda b, i, j: (b, j, 0)),
            ],
            out_specs=pl.BlockSpec((None, TQ, E), lambda b, i, j: (b, i, 0)),
            scratch_shapes=[
                pltpu.VMEM((TQ, E), compute_dtype),  # scaled-Q stash
                pltpu.VMEM((TQ, 1), jnp.float32),    # running max m (base 2)
                pltpu.VMEM((TQ, 1), jnp.float32),    # running sum l
                pltpu.VMEM((TQ, E), jnp.float32),    # output accumulator
            ],
        )
        dim_sem = ("parallel", "parallel", "arbitrary")
        bytes_accessed = q_bytes + o_bytes + kv_bytes * (L // TQ)  # re-streamed

    out = pl.pallas_call(
        kernel,
        out_shape=jax.ShapeDtypeStruct((BH, L, E), dtype),
        grid_spec=grid_spec,
        compiler_params=pltpu.CompilerParams(
            dimension_semantics=dim_sem,
            vmem_limit_bytes=vmem_limit,
        ),
        cost_estimate=pl.CostEstimate(
            flops=int(flops),
            transcendentals=int(transcendentals),
            bytes_accessed=int(bytes_accessed),
        ),
    )(q, k, v)

    return out.reshape(B, H, L, E)


def _sdpa_ref(query, key, value):
    """Pure-JAX f32 reference."""
    E = query.shape[-1]
    s = jnp.einsum("bhle,bhse->bhls", query.astype(jnp.float32),
                   key.astype(jnp.float32)) * (1.0 / math.sqrt(E))
    p = jax.nn.softmax(s, axis=-1)
    return jnp.einsum("bhls,bhse->bhle", p, value.astype(jnp.float32))


if __name__ == "__main__":
    # Small shapes (single q tile / single kv chunk; resident-K/V path).
    B, H, L, S, E = 2, 4, 8, 8, 32
    kq, kk, kv = jax.random.split(jax.random.PRNGKey(0), 3)
    query = jax.random.normal(kq, (B, H, L, E), dtype=jnp.float32)
    key_ = jax.random.normal(kk, (B, H, S, E), dtype=jnp.float32)
    value = jax.random.normal(kv, (B, H, S, E), dtype=jnp.float32)

    out = jax.block_until_ready(sdpa(query, key_, value))
    ref = _sdpa_ref(query, key_, value)
    assert out.shape == (B, H, L, E)
    # bf16 MXU operands for f32 inputs -> slightly looser tolerance vs f32 ref.
    assert jnp.allclose(out.astype(jnp.float32), ref, atol=2e-2, rtol=2e-2)

    # Larger shapes exercising the multi-kv-chunk online softmax (resident path).
    B2, H2, L2, S2, E2 = 1, 2, 256, 1024, 64
    kq2, kk2, kv2 = jax.random.split(jax.random.PRNGKey(1), 3)
    q2 = jax.random.normal(kq2, (B2, H2, L2, E2), dtype=jnp.float32)
    k2 = jax.random.normal(kk2, (B2, H2, S2, E2), dtype=jnp.float32)
    v2 = jax.random.normal(kv2, (B2, H2, S2, E2), dtype=jnp.float32)

    out2 = jax.block_until_ready(sdpa(q2, k2, v2))
    ref2 = _sdpa_ref(q2, k2, v2)
    assert out2.shape == (B2, H2, L2, E2)
    assert jnp.allclose(out2.astype(jnp.float32), ref2, atol=2e-2, rtol=2e-2)

    # Same shapes through the streamed-K/V 3-axis-grid path, bf16 inputs.
    q3, k3, v3 = (x.astype(jnp.bfloat16) for x in (q2, k2, v2))
    out3 = jax.block_until_ready(sdpa(q3, k3, v3, force_grid_kv=True))
    ref3 = _sdpa_ref(q3, k3, v3)
    assert out3.dtype == jnp.bfloat16
    assert jnp.allclose(out3.astype(jnp.float32), ref3, atol=3e-2, rtol=3e-2)

    print("KERNEL_OK")
</pallas_src>

<mosaic_0001>
module attributes {stable_mosaic.version = 11 : i64} {
  func.func @_sdpa_resident_kernel(%arg0: i32, %arg1: i32, %arg2: memref<1x8x32xf32, #tpu.memory_space<vmem>>, %arg3: memref<1x8x32xf32, #tpu.memory_space<vmem>>, %arg4: memref<1x8x32xf32, #tpu.memory_space<vmem>>, %arg5: memref<1x8x32xf32, #tpu.memory_space<vmem>>, %arg6: memref<8x1xf32, #tpu.memory_space<vmem>>, %arg7: memref<8x1xf32, #tpu.memory_space<vmem>>, %arg8: memref<8x32xf32, #tpu.memory_space<vmem>>) attributes {dimension_semantics = [#tpu.dimension_semantics<parallel>, #tpu.dimension_semantics<parallel>], iteration_bounds = array<i64: 8, 1>, scalar_prefetch = 0 : i64, scratch_operands = 3 : i64, tpu.core_type = #tpu.core_type<tc>, window_params = [{transform_indices = @transform_0, window_bounds = array<i64: 1, 8, 32>}, {transform_indices = @transform_1, window_bounds = array<i64: 1, 8, 32>}, {transform_indices = @transform_2, window_bounds = array<i64: 1, 8, 32>}, {transform_indices = @transform_3, window_bounds = array<i64: 1, 8, 32>}]} {
    %cst = arith.constant 0xFF800000 : f32
    %0 = vector.broadcast %cst : f32 to vector<8x1xf32>
    %c0 = arith.constant 0 : index
    %c0_0 = arith.constant 0 : index
    %1 = vector.load %arg6[%c0, %c0_0] : memref<8x1xf32, #tpu.memory_space<vmem>>, vector<8x1xf32>
    tpu.vector_store %arg6[%c0, %c0_0], %0 {strides = array<i32>} : memref<8x1xf32, #tpu.memory_space<vmem>>, vector<8x1xf32>,
    %cst_1 = arith.constant 0.000000e+00 : f32
    %2 = vector.broadcast %cst_1 : f32 to vector<8x1xf32>
    %c0_2 = arith.constant 0 : index
    %c0_3 = arith.constant 0 : index
    %3 = vector.load %arg7[%c0_2, %c0_3] : memref<8x1xf32, #tpu.memory_space<vmem>>, vector<8x1xf32>
    tpu.vector_store %arg7[%c0_2, %c0_3], %2 {strides = array<i32>} : memref<8x1xf32, #tpu.memory_space<vmem>>, vector<8x1xf32>,
    %cst_4 = arith.constant 0.000000e+00 : f32
    %4 = vector.broadcast %cst_4 : f32 to vector<8x32xf32>
    %c0_5 = arith.constant 0 : index
    %c0_6 = arith.constant 0 : index
    %5 = vector.load %arg8[%c0_5, %c0_6] : memref<8x32xf32, #tpu.memory_space<vmem>>, vector<8x32xf32>
    tpu.vector_store %arg8[%c0_5, %c0_6], %4 {strides = array<i32>} : memref<8x32xf32, #tpu.memory_space<vmem>>, vector<8x32xf32>,
    %c0_7 = arith.constant 0 : index
    %c0_8 = arith.constant 0 : index
    %c0_9 = arith.constant 0 : index
    %6 = vector.load %arg2[%c0_7, %c0_8, %c0_9] : memref<1x8x32xf32, #tpu.memory_space<vmem>>, vector<1x8x32xf32>
    %7 = vector.shape_cast %6 : vector<1x8x32xf32> to vector<8x32xf32>
    %cst_10 = arith.constant 0.255034864 : f32
    %8 = vector.broadcast %cst_10 : f32 to vector<8x32xf32>
    %9 = arith.mulf %7, %8 : vector<8x32xf32>
    %10 = arith.truncf %9 : vector<8x32xf32> to vector<8x32xbf16>
    %c0_i32 = arith.constant 0 : i32
    %c1_i32 = arith.constant 1 : i32
    %11 = arith.muli %c0_i32, %c1_i32 : i32
    %c0_i32_11 = arith.constant 0 : i32
    %12 = arith.addi %c0_i32_11, %11 : i32
    %c8_i32 = arith.constant 8 : i32
    %13 = arith.muli %12, %c8_i32 : i32
    %14 = tpu.assume_multiple %13, 8 : i32
    %c0_12 = arith.constant 0 : index
    %15 = arith.index_cast %14 : i32 to index
    %c0_13 = arith.constant 0 : index
    %16 = vector.load %arg3[%c0_12, %15, %c0_13] : memref<1x8x32xf32, #tpu.memory_space<vmem>>, vector<1x8x32xf32>
    %17 = vector.shape_cast %16 : vector<1x8x32xf32> to vector<8x32xf32>
    %18 = arith.truncf %17 : vector<8x32xf32> to vector<8x32xbf16>
    %c0_14 = arith.constant 0 : index
    %19 = arith.index_cast %14 : i32 to index
    %c0_15 = arith.constant 0 : index
    %20 = vector.load %arg4[%c0_14, %19, %c0_15] : memref<1x8x32xf32, #tpu.memory_space<vmem>>, vector<1x8x32xf32>
    %21 = vector.shape_cast %20 : vector<1x8x32xf32> to vector<8x32xf32>
    %22 = arith.truncf %21 : vector<8x32xf32> to vector<8x32xbf16>
    %cst_16 = arith.constant dense<0.000000e+00> : vector<8x8xf32>
    %23 = tpu.matmul %10, %18, %cst_16 {dimension_numbers = #tpu.dot_dimension_numbers<[1], [1], [0], [0], [0, 0, 1, 0], [], []>} : vector<8x32xbf16>, vector<8x32xbf16>, vector<8x8xf32> -> vector<8x8xf32>
    %c0_17 = arith.constant 0 : index
    %c0_18 = arith.constant 0 : index
    %24 = vector.load %arg6[%c0_17, %c0_18] : memref<8x1xf32, #tpu.memory_space<vmem>>, vector<8x1xf32>
    %cst_19 = arith.constant dense<0xFF800000> : vector<8xf32>
    %25 = vector.multi_reduction <maximumf>, %23, %cst_19 [1] : vector<8x8xf32> to vector<8xf32>
    %26 = vector.shape_cast %25 : vector<8xf32> to vector<8x1xf32>
    %27 = arith.maximumf %24, %26 : vector<8x1xf32>
    %28 = arith.subf %24, %27 : vector<8x1xf32>
    %29 = math.exp2 %28 : vector<8x1xf32>
    %30 = vector.broadcast %27 : vector<8x1xf32> to vector<8x8xf32>
    %31 = arith.subf %23, %30 : vector<8x8xf32>
    %32 = math.exp2 %31 : vector<8x8xf32>
    %c0_20 = arith.constant 0 : index
    %c0_21 = arith.constant 0 : index
    %33 = vector.load %arg7[%c0_20, %c0_21] : memref<8x1xf32, #tpu.memory_space<vmem>>, vector<8x1xf32>
    %34 = arith.mulf %29, %33 : vector<8x1xf32>
    %cst_22 = arith.constant dense<0.000000e+00> : vector<8xf32>
    %35 = vector.multi_reduction <add>, %32, %cst_22 [1] : vector<8x8xf32> to vector<8xf32>
    %36 = vector.shape_cast %35 : vector<8xf32> to vector<8x1xf32>
    %37 = arith.addf %34, %36 : vector<8x1xf32>
    %c0_23 = arith.constant 0 : index
    %c0_24 = arith.constant 0 : index
    %38 = vector.load %arg7[%c0_23, %c0_24] : memref<8x1xf32, #tpu.memory_space<vmem>>, vector<8x1xf32>
    tpu.vector_store %arg7[%c0_23, %c0_24], %37 {strides = array<i32>} : memref<8x1xf32, #tpu.memory_space<vmem>>, vector<8x1xf32>,
    %c0_25 = arith.constant 0 : index
    %c0_26 = arith.constant 0 : index
    %39 = vector.load %arg8[%c0_25, %c0_26] : memref<8x32xf32, #tpu.memory_space<vmem>>, vector<8x32xf32>
    %40 = vector.broadcast %29 : vector<8x1xf32> to vector<8x32xf32>
    %41 = arith.mulf %40, %39 : vector<8x32xf32>
    %42 = arith.truncf %32 : vector<8x8xf32> to vector<8x8xbf16>
    %cst_27 = arith.constant dense<0.000000e+00> : vector<8x32xf32>
    %43 = tpu.matmul %42, %22, %cst_27 {dimension_numbers = #tpu.dot_dimension_numbers<[1], [0], [0], [1], [0, 0, 1, 1], [], []>} : vector<8x8xbf16>, vector<8x32xbf16>, vector<8x32xf32> -> vector<8x32xf32>
    %44 = arith.addf %41, %43 : vector<8x32xf32>
    %c0_28 = arith.constant 0 : index
    %c0_29 = arith.constant 0 : index
    %45 = vector.load %arg8[%c0_28, %c0_29] : memref<8x32xf32, #tpu.memory_space<vmem>>, vector<8x32xf32>
    tpu.vector_store %arg8[%c0_28, %c0_29], %44 {strides = array<i32>} : memref<8x32xf32, #tpu.memory_space<vmem>>, vector<8x32xf32>,
    %c0_30 = arith.constant 0 : index
    %c0_31 = arith.constant 0 : index
    %46 = vector.load %arg6[%c0_30, %c0_31] : memref<8x1xf32, #tpu.memory_space<vmem>>, vector<8x1xf32>
    tpu.vector_store %arg6[%c0_30, %c0_31], %27 {strides = array<i32>} : memref<8x1xf32, #tpu.memory_space<vmem>>, vector<8x1xf32>,
    %c1_i32_32 = arith.constant 1 : i32
    %c0_33 = arith.constant 0 : index
    %c0_34 = arith.constant 0 : index
    %47 = vector.load %arg7[%c0_33, %c0_34] : memref<8x1xf32, #tpu.memory_space<vmem>>, vector<8x1xf32>
    %48 = tpu.reciprocal %47 : vector<8x1xf32> -> vector<8x1xf32>
    %c0_35 = arith.constant 0 : index
    %c0_36 = arith.constant 0 : index
    %49 = vector.load %arg8[%c0_35, %c0_36] : memref<8x32xf32, #tpu.memory_space<vmem>>, vector<8x32xf32>
    %50 = vector.broadcast %48 : vector<8x1xf32> to vector<8x32xf32>
    %51 = arith.mulf %49, %50 : vector<8x32xf32>
    %c0_37 = arith.constant 0 : index
    %c0_38 = arith.constant 0 : index
    %c0_39 = arith.constant 0 : index
    %52 = vector.load %arg5[%c0_37, %c0_38, %c0_39] : memref<1x8x32xf32, #tpu.memory_space<vmem>>, vector<1x8x32xf32>
    %53 = vector.shape_cast %52 : vector<1x8x32xf32> to vector<8x32xf32>
    %54 = vector.shape_cast %51 : vector<8x32xf32> to vector<1x8x32xf32>
    tpu.vector_store %arg5[%c0_37, %c0_38, %c0_39], %54 {strides = array<i32>} : memref<1x8x32xf32, #tpu.memory_space<vmem>>, vector<1x8x32xf32>,
    return
  }
  func.func @transform_0(%arg0: i32, %arg1: i32) -> (i32, i32, i32) {
    %c0_i32 = arith.constant 0 : i32
    %c0_i32_0 = arith.constant 0 : i32
    return %arg0, %arg1, %c0_i32 : i32, i32, i32
  }
  func.func @transform_1(%arg0: i32, %arg1: i32) -> (i32, i32, i32) {
    %c0_i32 = arith.constant 0 : i32
    %c0_i32_0 = arith.constant 0 : i32
    %c0_i32_1 = arith.constant 0 : i32
    return %arg0, %c0_i32, %c0_i32_0 : i32, i32, i32
  }
  func.func @transform_2(%arg0: i32, %arg1: i32) -> (i32, i32, i32) {
    %c0_i32 = arith.constant 0 : i32
    %c0_i32_0 = arith.constant 0 : i32
    %c0_i32_1 = arith.constant 0 : i32
    return %arg0, %c0_i32, %c0_i32_0 : i32, i32, i32
  }
  func.func @transform_3(%arg0: i32, %arg1: i32) -> (i32, i32, i32) {
    %c0_i32 = arith.constant 0 : i32
    %c0_i32_0 = arith.constant 0 : i32
    return %arg0, %arg1, %c0_i32 : i32, i32, i32
  }
}

</mosaic_0001>

<bundles_post_ra>
// kernel: tpu_custom_call.1
= control target key start
LH: loop header
LB: loop body
LE: loop exit
PB: predicated region body
PF: predicated region fallthrough
CT: control target
= control target key end

     0   :  { %s1002_s0 = inlined_call_operand.hbm [shape: f32[8,8,32], index: 0, kind: input, shape index: {}]   ;;  %s1003_s1 = inlined_call_operand.hbm [shape: f32[8,8,32], index: 1, kind: input, shape index: {}]   ;;  %s1004_s2 = inlined_call_operand.hbm [shape: f32[8,8,32], index: 2, kind: input, shape index: {}]   ;;  %s1005_s3 = inlined_call_operand.hbm [shape: f32[8,8,32], index: 3, kind: output, shape index: {}]  }
   0x1   :  { %1008 = sst [smem:[#allocation18_spill]] %s1003_s1 }
   0x2   :  { %8 = vsyncpa [#allocation6], 0 }
   0x3   :  { %10 = vsyncpa [#allocation6 + $0x1], 0 }
   0x4   :  { %11 = vsyncpa [#allocation9], 0 }
   0x5   :  { %13 = vsyncpa [#allocation9 + $0x1], 0 }
   0x6   :  { %14 = vsyncpa [#allocation7], 0 }
   0x7   :  { %16 = vsyncpa [#allocation7 + $0x1], 0  ;;  %s834_s12 = smov 0   ;;  %s836_s13 = smov 0  }
   0x8   :  { %s838_s14 = smov 0   ;;  %s840_s15 = smov 0  }
   0x9   :  { %s842_s16 = smov 0   ;;  %s844_s17 = smov 0  }
   0xa LB: > { %1009 = sst [smem:[#allocation15_spill]] %s805_s16  ;;  %s865_s18 = sadd.s32 4294967295, %s809_s17   ;;  %s809_s17 = sphi %s844_s17, %s22_s17   ;;  %s805_s16 = sphi %s842_s16, %s1021_s16   ;;  %s801_s15 = sphi %s840_s15, %s1020_s15   ;;  %s797_s14 = sphi %s838_s14, %s1024_s14   ;;  %s793_s13 = sphi %s836_s13, %s1023_s13   ;;  %s789_s12 = sphi %s834_s12, %s1022_s12  }
   0xb   : > { %s529_s19 = sadd.s32 4294967294, %s809_s17   ;;  %s34_s20 = sadd.s32 1, %s805_s16 }
   0xc   : > { %s43_s21 = sadd.s32 1, %s797_s14  ;;  %p36_p0 = scmp.ge.s32.totalorder %s34_s20, 8 }
   0xd   : > { %p50_p1 = scmp.ne.s32.totalorder %s797_s14, %s793_s13  ;;  %p51_p2 = scmp.eq.s32.totalorder %s809_s17, 0 }
   0xe   : > { %p56_p3 = scmp.ne.s32.totalorder %s793_s13, %s789_s12  ;;  %s1026_s20 = smov (%p36_p0, %s34_s20), 0 }
   0xf   : > { %1010 = sst [smem:[#allocation16_spill]] %s1026_s20  ;;  %p877_p4 = por %p51_p2, %p50_p1 }
  0x10   : > { %p57_p5 = scmp.eq.s32.totalorder %s865_s18, 0  ;;  %s38_s23 = ssub.s32 %s805_s16, %s1026_s20 }
  0x11   : > { %p134_p6 = scmp.eq.s32.totalorder %s865_s18, 7  ;;  %p41_p7 = scmp.eq.s32.totalorder %s38_s23, 0 }
  0x12   : > { %p885_p8 = por %p57_p5, %p56_p3  ;;  %p140_p10 = scmp.eq.s32.totalorder %s529_s19, 7 }
  0x13   : > { %p889_p9 = por %p134_p6, %p50_p1  ;;  %p571_p12 = scmp.lt.s32.totalorder %s809_s17, 8 }
  0x14   : > { %s894_s26 = scalar_select %p41_p7, %s797_s14, %s43_s21  }
  0x15   : > { %p896_p11 = por %p140_p10, %p56_p3  ;;  %s160_s28 = sand.u32 1, %s797_s14  }
  0x16   : > { %1014 = sst [smem:[#allocation17_spill]] %s894_s26  ;;  %s532_s29 = sshll.u32 %s160_s28, 3 }
  0x17   : > { %s533_s30 = sshll.u32 %s805_s16, 3  ;;  %p905_p13 = pnand %p571_p12, %p877_p4 }
  0x18   : > { %s180_s5 = sand.u32 1, %s809_s17   ;;  %s1017_s1 = sld [smem:[#allocation18_spill]] }
  0x19   : > { %s184_s10 = scalar_lea.vmem [#allocation8], %s532_s29  ;;  %s181_s19 = scalar_lea.sflag [#allocation9], %s180_s5 }
  0x1a   : > { %s192_s11 = sshll.u32 %s184_s10, 4  ;;  %p538_p0 = scmp.ge.s32.totalorder %s809_s17, 1  ;;  %s193_s11 = int_to_ptr.vmem [resolvable:$true] %s192_s11 }
  0x1b   : > { %p216_p1 = scmp.lt.s32.totalorder %s809_s17, 9  ;;  %s169_s6 = scalar_lea.hbm %s1002_s0, %s533_s30 }
  0x1c   : > { %s171_s7 = sshll.u32 %s169_s6, 4  ;;  %s161_s10 = scalar_lea.sflag [#allocation6], %s160_s28  ;;  %s172_s7 = int_to_ptr.hbm [resolvable:$true] %s171_s7 }
  0x1d   : > { %p917_p2 = pnand %p538_p0, %p216_p1  ;;  %s203_s16 = scalar_lea.vmem [#allocation10], %s532_s29 }
  0x1e   : > { %s188_s8 = scalar_lea.hbm %s1017_s1, %s533_s30  ;;  %s211_s26 = sshll.u32 %s203_s16, 4  ;;  %s212_s26 = int_to_ptr.vmem [resolvable:$true] %s211_s26 }
  0x1f   : > { %s190_s9 = sshll.u32 %s188_s8, 4  ;;  %s164_s8 = scalar_lea.vmem [#allocation5], %s532_s29  ;;  %s191_s9 = int_to_ptr.hbm [resolvable:$true] %s190_s9 }
  0x20   : > { %563 = dma.hbm_to_vmem [thread:$0]  (!%p905_p13), %s191_s9, 128, %s193_s11, %s181_s19  }
  0x21   : > { %s173_s1 = sshll.u32 %s164_s8, 4  ;;  %s207_s11 = scalar_lea.hbm %s1004_s2, %s533_s30  ;;  %s174_s1 = int_to_ptr.vmem [resolvable:$true] %s173_s1 }
  0x22   : > { %560 = dma.hbm_to_vmem [thread:$0]  (!%p905_p13), %s172_s7, 128, %s174_s1, %s161_s10  }
  0x23   : > { %s209_s20 = sshll.u32 %s207_s11, 4  ;;  %220 = sbr.rel (%p917_p2) target bundleno = 664 (0x298), region = 32  ;;  %s210_s20 = int_to_ptr.hbm [resolvable:$true] %s209_s20 }
  0x24   : > { %566 = dma.hbm_to_vmem [thread:$0]  (!%p905_p13), %s210_s20, 128, %s212_s26, %s181_s19  }
  0x25   : > { %s934_s22 = sand.u32 (!%p917_p2), 1, %s793_s13  }
  0x26   : > { %s937_s1 = sshll.u32 (!%p917_p2), %s934_s22, 3  ;;  %s223_s28 = scalar_lea.sflag (!%p917_p2), [#allocation6], %s934_s22 }
  0x27   : > { %s226_s30 = scalar_lea.vmem (!%p917_p2), [#allocation5], %s937_s1 }
  0x28   : > { %776 = dma.done.wait (%p885_p8), %s223_s28, 128  }
  0x29   : > { %778 = vsyncadd (%p885_p8), %s223_s28, 4294967168  ;;  %s232_s16 = sand.u32 1, %s865_s18   ;;  %s236_s26 = scalar_lea.vmem [#allocation8], %s937_s1 }
  0x2a   : > { %s233_s20 = scalar_lea.sflag [#allocation9], %s232_s16 }
  0x2b   : > { %780 = dma.done.wait (%p885_p8), %s233_s20, 256  }
  0x2c   : > { %782 = vsyncadd (%p885_p8), %s233_s20, 4294967040  ;;  %vm284_vm0 = vcmask 261120   ;;  %v811_v0 = vmov 0.0   ;;  %v289_v1 = vld [vmem:[%s236_s26] sm:$0xff]  ;;  %v286_v2 = vld [vmem:[%s226_s30] sm:$0xff]  ;;  %vm281_vm1 = vcmask 7168  }
  0x2d   : > { %285 = vst.msk [vmem:[#allocation4] sm:$0xff] %vm284_vm0, %v811_v0  ;;  %v290_v3 = vpack.c.bf16 %v289_v1, %v289_v1  ;;  %v287_v5 = vmul.f32 0.25503486, %v286_v2  ;;  %v812_v7 = vmov -inf   ;;  %vm313_vm2 = vcmask 64512   ;;  %s246_s18 = scalar_lea.vmem [#allocation10], %s937_s1 }
  0x2e   : > { %282 = vst.msk [vmem:[#allocation2] sm:$0xff] %vm281_vm1, %v812_v7  ;;  %v813_v11 = vmov 0   ;;  %v291_v16 = vld [vmem:[%s246_s18] sm:$0xff]  ;;  %vm345_vm3 = vcmask 1043456   ;;  %s546_s24 = sshll.u32 %s801_s15, 3  ;;  %s279_s21 = scalar_lea.vmem [#allocation11], %s937_s1 }
  0x2f   : > { %v297_v4 = vsel %vm284_vm0, %v290_v3, 0  ;;  %v288_v6 = vpack.c.bf16 %v287_v5, %v287_v5  ;;  %283 = vst.msk [vmem:[#allocation3] sm:$0xff] %vm281_vm1, %v811_v0  ;;  %624 = vset.pattern.permute.xlu0 %v813_v11  ;;  %625 = vset.pattern.permute.xlu1 %v813_v11  ;;  %v292_v17 = vpack.c.bf16 %v291_v16, %v291_v16  ;;  %s400_s19 = scalar_lea.hbm %s1005_s3, %s546_s24  ;;  %s402_s23 = sshll.u32 %s279_s21, 4  ;;  %s403_s23 = int_to_ptr.vmem [resolvable:$true] %s402_s23 }
  0x30   : > { %306 = vmatpush.bf16.xpose.msra.mxu0 %v297_v4  ;;  %626 = vset.pattern.permute.xlu2 %v813_v11  ;;  %s404_s6 = sshll.u32 %s400_s19, 4  ;;  %s389_s7 = scalar_lea.sflag [#allocation7], %s934_s22  ;;  %s405_s6 = int_to_ptr.hbm [resolvable:$true] %s404_s6 }
  0x31   : > { %v347_v18 = vsel %vm345_vm3, %v292_v17, 0  ;;  %s737_s8 = sshra.s32 %s405_s6, 4  ;;  %s743_s9 = scalar_lea.hbm %s1005_s3, 64  ;;  %s738_s8 = int_to_ptr.hbm [resolvable:$true] %s737_s8 }
  0x32   : > { %356 = vmatpush.bf16.msra.mxu1 %v347_v18  ;;  %s739_s10 = scalar_lea.hbm %s738_s8, 8  ;;  %p744_p6 = scmp.lt.s32.totalorder %s738_s8, %s1005_s3 }
  0x33   : > { %p740_p3 = scmp.ne.s32.totalorder %s738_s8, %s739_s10  ;;  %p745_p7 = scmp.lt.s32.totalorder %s743_s9, %s739_s10 }
  0x34   : > { %v334_v36 = vld [vmem:[#allocation4] sm:$0xff] }
  0x35   : > { %v312_v12 = vld [vmem:[#allocation2] sm:$0xff]  ;;  %p741_p4 = pnand %p740_p3, %p889_p9  ;;  %p746_p8 = por %p745_p7, %p744_p6 }
  0x36   : > { %v327_v25 = vld [vmem:[#allocation3] sm:$0xff] }
  0x37   : > { %543 = vmatmul.msk.bf16.vlgmr.msra.gmra.mxu0 %vm284_vm0, %v288_v6  ;;  %p742_p5 = pneg %p741_p4 }
  0x39   : > { %p747_p10 = pnand %p746_p8, %p742_p5 }
  0xb4   : > { %v308_v8 = vpop.f32.mrf.mxu0 }
  0xb5   : > { %v314_v9 = vsel %vm313_vm2, %v308_v8, -inf }
  0xb6   : > { %315 = vmax.xlane.f32.xlu0 %v314_v9 }
  0xbc   : > { %v310_v10 = vpop.f32.mrf.mxu0 }
 0x129   : > { %v316_v13 = vpop.xlane.xlu0 %315 }
 0x12a   : > { %v317_v14 = vmax.f32 %v312_v12, %v316_v13 }
 0x12c   : > { %v318_v15 = vsub.f32 %v312_v12, %v317_v14  ;;  %364 = vst.msk [vmem:[#allocation2] sm:$0xff] %vm281_vm1, %v317_v14  ;;  %322 = vperm.xlu0 %624, %v317_v14  }
 0x19e   : > { %v323_v19 = vpop.permute.xlu0 %322 }
 0x19f   : > { %v325_v20 = vsub.f32 %v308_v8, %v323_v19 }
 0x1a1   : > { %627 = vpow2.f32 %v325_v20 }
 0x1a2   : > { %629 = vpow2.f32 %v318_v15 }
 0x1a7   : > { %v628_v21 = vpop.eup %627 }
 0x1a8   : > { %v329_v22 = vsel %vm313_vm2, %v628_v21, 0.0  ;;  %v341_v23 = vpack.c.bf16 %v628_v21, %v628_v21  ;;  %v630_v24 = vpop.eup %629 }
 0x1a9   : > { %330 = vadd.xlane.f32.xlu1 %v329_v22  ;;  %v328_v26 = vmul.f32 %v630_v24, %v327_v25 }
 0x1aa   : > { %544 = vmatmul.msk.bf16.vlgmr.msra.gmra.mxu1 %vm313_vm2, %v341_v23 }
 0x1c2   : > { %337 = vperm.xlu1 %625, %v630_v24  }
 0x21c   : > { %v331_v27 = vpop.xlane.xlu1 %330 }
 0x21d   : > { %v332_v28 = vadd.f32 %v331_v27, %v328_v26 }
 0x21f   : > { %333 = vst.msk [vmem:[#allocation3] sm:$0xff] %vm281_vm1, %v332_v28 }
 0x226   : > { %v365_v29 = vld [vmem:[#allocation3] sm:$0xff] }
 0x227   : > { %v358_v30 = vpop.f32.mrf.mxu1  ;;  %631 = vrcp.f32 %v365_v29  ;;  %v377_v35 = vand.u32 2147483648, %v365_v29  ;;  %v375_v38 = vand.u32 2147483647, %v365_v29  ;;  %vm371_vm5 = vweird.f32 %v365_v29 }
 0x229   : > { %v378_v42 = vor.u32 1.1754944e-38, %v377_v35  ;;  %vm376_vm7 = vcmp.eq.f32.partialorder %v375_v38, 8.507059e+37 }
 0x22d   : > { %v632_v31 = vpop.eup %631 }
 0x22e   : > { %v367_v32 = vmul.f32 %v632_v31, %v365_v29  ;;  %vm372_vm4 = vweird.f32 %v632_v31 }
 0x22f   : > { %v360_v33 = vpop.f32.mrf.mxu1  ;;  %vm373_vm6 = vmor %vm371_vm5, %vm372_vm4 }
 0x230   : > { %v368_v34 = vsub.f32 1.0, %v367_v32 }
 0x232   : > { %v369_v37 = vmul.f32 %v632_v31, %v368_v34 }
 0x234   : > { %v338_v39 = vpop.permute.xlu1 %337  ;;  %v370_v40 = vadd.f32 %v632_v31, %v369_v37 }
 0x235   : > { %v340_v41 = vmul.f32 %v338_v39, %v334_v36 }
 0x236   : > { %v374_v43 = vsel %vm373_vm6, %v632_v31, %v370_v40 }
 0x237   : > { %v362_v44 = vadd.f32 %v358_v30, %v340_v41  ;;  %v379_v45 = vsel %vm376_vm7, %v378_v42, %v374_v43 }
 0x238   : > { %383 = vperm.xlu2 %626, %v379_v45  }
 0x239   : > { %363 = vst.msk [vmem:[#allocation4] sm:$0xff] %vm284_vm0, %v362_v44 }
 0x240   : > { %v380_v46 = vld [vmem:[#allocation4] sm:$0xff] }
 0x292   : > { %v384_v47 = vpop.permute.xlu2 %383 }
 0x293   : > { %v386_v48 = vmul.f32 %v384_v47, %v380_v46 }
 0x295   : > { %387 = vst.msk [vmem:[%s279_s21] sm:$0xff] %vm284_vm0, %v386_v48 }
 0x296   : > { %750 = shalt.err (!%p747_p10)
}
 0x297   : > { %555 = dma.vmem_to_hbm [thread:$0]  (%p889_p9), %s403_s23, 128, %s405_s6, %s389_s7  }
 0x298 PF: > { %p572_p12 = scmp.ge.s32.totalorder %s809_s17, 2  ;;  %s416_s22 = sand.u32 1, %s789_s12  }
 0x299   : > { %s417_s28 = scalar_lea.sflag [#allocation7], %s416_s22 }
 0x29a   : > { %p568_p13 = pnand %p572_p12, %p896_p11 }
 0x29c   : > { %p569_p0 = pneg %p568_p13 }
 0x29e   : > { %784 = dma.done.wait (%p569_p0), %s417_s28, 128  }
 0x29f   : > { %786 = vsyncadd (%p569_p0), %s417_s28, 4294967168  ;;  %s22_s17 = sadd.s32 1, %s809_s17   ;;  %s1019_s30 = sld [smem:[#allocation17_spill]] }
 0x2a0   : > { %p19_p1 = scmp.ge.s32.totalorder %s22_s17, 10   ;;  %s1020_s15 = sld [smem:[#allocation15_spill]] }
 0x2a1   : > { %s1021_s16 = sld [smem:[#allocation16_spill]]  ;;  %s1022_s12 = smov %s793_s13 }
 0x2a2   : > { %s1023_s13 = smov %s797_s14  ;;  %21 = sbr.rel (!%p19_p1) target bundleno = 10 (0xa), region = 101 }
 0x2a5   : > { %s1024_s14 = smov %s1019_s30 }
 0x2a7   :  { %423 = vsyncpa [#allocation6], 1 }
 0x2a8   :  { %425 = vsyncpa [#allocation6 + $0x1], 1 }
 0x2a9   :  { %426 = vsyncpa [#allocation9], 1 }
 0x2aa   :  { %428 = vsyncpa [#allocation9 + $0x1], 1 }
 0x2ab   :  { %429 = vsyncpa [#allocation7], 1 }
 0x2ac   :  { %431 = vsyncpa [#allocation7 + $0x1], 1 }

</bundles_post_ra>
